<compile_context>
chip_gen: v6e
topology: v6e:2x2x1
jax: 0.10.0
libtpu: 0.0.40
codegen_flags: <defaults>
</compile_context>

<pallas_src>
import jax
import jax.numpy as jnp
from jax.experimental import pallas as pl
from jax.experimental.pallas import tpu as pltpu


def deepnn_kernel(x_ref,
                  w1_ref, b1_ref,
                  w2_ref, b2_ref,
                  w3_ref, b3_ref,
                  w4_ref, b4_ref,
                  o_ref):
    """One batch tile: 3x (matmul + bias + ReLU), final matmul + bias + softmax."""
    w_dtype = w1_ref.dtype  # compute dtype fed to the MXU (f32 or bf16)
    x = x_ref[...]

    h = jnp.dot(x, w1_ref[...], preferred_element_type=jnp.float32) + b1_ref[...]
    h = jnp.maximum(h, 0.0)

    h = jnp.dot(h.astype(w_dtype), w2_ref[...],
                preferred_element_type=jnp.float32) + b2_ref[...]
    h = jnp.maximum(h, 0.0)

    h = jnp.dot(h.astype(w_dtype), w3_ref[...],
                preferred_element_type=jnp.float32) + b3_ref[...]
    h = jnp.maximum(h, 0.0)

    logits = jnp.dot(h.astype(w_dtype), w4_ref[...],
                     preferred_element_type=jnp.float32) + b4_ref[...]

    # Numerically stable softmax along dim=1 (classes), all in f32.
    m = jnp.max(logits, axis=1, keepdims=True)
    e = jnp.exp(logits - m)
    denom = jnp.sum(e, axis=1, keepdims=True)
    # pl.reciprocal(..., approx=True) would move the divide to the EUP, but it
    # relaxes row-sum exactness; exact reciprocal kept here for tight checks.
    o_ref[...] = (e * pl.reciprocal(denom, approx=False)).astype(o_ref.dtype)


def _round_up(n, m):
    return ((n + m - 1) // m) * m


def prepare_params(params, weight_dtype=jnp.float32):
    """One-time conversion from PyTorch convention to kernel layout.

    (out, in) weights -> (in, out); (out,) biases -> (1, out) f32.
    Pass weight_dtype=jnp.bfloat16 for the bandwidth-saving bf16 path.
    """
    prepared = []
    for w, b in params:
        prepared.append((jnp.asarray(w.T, dtype=weight_dtype),
                         jnp.asarray(b, dtype=jnp.float32).reshape(1, -1)))
    return tuple(prepared)


def deepnn_forward(x, prepared_params, *, tile_b=2048):
    """Batch-tiled Pallas forward pass. `prepared_params` comes from prepare_params()."""
    (w1, b1), (w2, b2), (w3, b3), (w4, b4) = prepared_params
    batch, input_size = x.shape
    num_classes = w4.shape[1]
    compute_dtype = w1.dtype

    # Stream x in the same dtype as the weights (bf16 halves HBM traffic).
    x = x.astype(compute_dtype)

    # Batch tile: multiple of 8 sublanes, never larger than the (padded) batch.
    tile_b = max(8, min(_round_up(tile_b, 8), _round_up(batch, 8)))
    padded_batch = _round_up(batch, tile_b)
    if padded_batch != batch:
        # Ragged last tile: zero-pad; padded rows produce valid-but-unused
        # softmax rows which are sliced off below.
        x = jnp.pad(x, ((0, padded_batch - batch), (0, 0)))

    grid = (pl.cdiv(padded_batch, tile_b),)

    def resident(arr):
        # Full-array block, same block index every grid step -> loaded once and
        # kept resident in VMEM across the whole batch sweep.
        return pl.BlockSpec(arr.shape, lambda i: (0,) * arr.ndim)

    in_specs = [
        pl.BlockSpec((tile_b, input_size), lambda i: (i, 0)),   # x: tiled over batch
        resident(w1), resident(b1),
        resident(w2), resident(b2),
        resident(w3), resident(b3),
        resident(w4), resident(b4),
    ]
    out_specs = pl.BlockSpec((tile_b, num_classes), lambda i: (i, 0))

    out = pl.pallas_call(
        deepnn_kernel,
        out_shape=jax.ShapeDtypeStruct((padded_batch, num_classes), jnp.float32),
        grid=grid,
        in_specs=in_specs,
        out_specs=out_specs,
        compiler_params=pltpu.CompilerParams(
            dimension_semantics=("parallel",)),  # megacore sharding on v7x
    )(x, w1, b1, w2, b2, w3, b3, w4, b4)

    return out[:batch]


def init_params(key, input_size, num_classes):
    """Deterministic PyTorch-Linear-style init (uniform(-1/sqrt(fan_in), 1/sqrt(fan_in)))."""
    sizes = [(input_size, 18), (18, 54), (54, 12), (12, num_classes)]
    params = []
    for (fan_in, fan_out) in sizes:
        key, kw, kb = jax.random.split(key, 3)
        bound = 1.0 / jnp.sqrt(jnp.float32(fan_in))
        w = jax.random.uniform(kw, (fan_out, fan_in), jnp.float32, -bound, bound)
        b = jax.random.uniform(kb, (fan_out,), jnp.float32, -bound, bound)
        params.append((w, b))
    return params


def reference_forward(x, params):
    """Plain-JAX f32 reference for sanity checking (PyTorch weight convention)."""
    (w1, b1), (w2, b2), (w3, b3), (w4, b4) = params
    h = jnp.maximum(x @ w1.T + b1, 0.0)
    h = jnp.maximum(h @ w2.T + b2, 0.0)
    h = jnp.maximum(h @ w3.T + b3, 0.0)
    logits = h @ w4.T + b4
    return jax.nn.softmax(logits, axis=1)


if __name__ == "__main__":
    key = jax.random.PRNGKey(0)
    batch, input_size, num_classes = 8, 16, 3

    key, kx, kp = jax.random.split(key, 3)
    x = jax.random.normal(kx, (batch, input_size), jnp.float32)
    params = init_params(kp, input_size, num_classes)
    ref = reference_forward(x, params)

    # --- f32 path: bit-tight against the reference --------------------------
    prepared_f32 = prepare_params(params, jnp.float32)
    out = jax.block_until_ready(deepnn_forward(x, prepared_f32, tile_b=2048))
    assert out.shape == (batch, num_classes)
    assert jnp.allclose(out, ref, atol=1e-5, rtol=1e-5)
    assert jnp.allclose(jnp.sum(out, axis=1), jnp.ones((batch,)), atol=1e-5)

    # --- bf16 streaming path: halves HBM bytes, f32 accumulation ------------
    prepared_bf16 = prepare_params(params, jnp.bfloat16)
    out_bf16 = jax.block_until_ready(deepnn_forward(x, prepared_bf16, tile_b=2048))
    assert out_bf16.shape == (batch, num_classes)
    assert jnp.allclose(out_bf16, ref, atol=1e-2)
    assert jnp.allclose(jnp.sum(out_bf16, axis=1), jnp.ones((batch,)), atol=1e-4)

    # --- ragged batch (not a multiple of the tile) exercises grid + padding --
    key, kr = jax.random.split(key)
    xr = jax.random.normal(kr, (13, input_size), jnp.float32)
    outr = jax.block_until_ready(deepnn_forward(xr, prepared_f32, tile_b=8))
    assert outr.shape == (13, num_classes)
    assert jnp.allclose(outr, reference_forward(xr, params), atol=1e-5, rtol=1e-5)

    print("KERNEL_OK")
</pallas_src>

<mosaic_0001>
module attributes {stable_mosaic.version = 11 : i64} {
  func.func @deepnn_kernel(%arg0: i32, %arg1: memref<8x16xf32, #tpu.memory_space<vmem>>, %arg2: memref<16x18xf32, #tpu.memory_space<vmem>>, %arg3: memref<1x18xf32, #tpu.memory_space<vmem>>, %arg4: memref<18x54xf32, #tpu.memory_space<vmem>>, %arg5: memref<1x54xf32, #tpu.memory_space<vmem>>, %arg6: memref<54x12xf32, #tpu.memory_space<vmem>>, %arg7: memref<1x12xf32, #tpu.memory_space<vmem>>, %arg8: memref<12x3xf32, #tpu.memory_space<vmem>>, %arg9: memref<1x3xf32, #tpu.memory_space<vmem>>, %arg10: memref<8x3xf32, #tpu.memory_space<vmem>>) attributes {dimension_semantics = [#tpu.dimension_semantics<parallel>], iteration_bounds = array<i64: 1>, scalar_prefetch = 0 : i64, scratch_operands = 0 : i64, tpu.core_type = #tpu.core_type<tc>, window_params = [{transform_indices = @transform_0, window_bounds = array<i64: 8, 16>}, {pipeline_mode = #tpu.pipeline_mode<synchronous>, transform_indices = @transform_1, window_bounds = array<i64: 16, 18>}, {pipeline_mode = #tpu.pipeline_mode<synchronous>, transform_indices = @transform_2, window_bounds = array<i64: 1, 18>}, {pipeline_mode = #tpu.pipeline_mode<synchronous>, transform_indices = @transform_3, window_bounds = array<i64: 18, 54>}, {pipeline_mode = #tpu.pipeline_mode<synchronous>, transform_indices = @transform_4, window_bounds = array<i64: 1, 54>}, {pipeline_mode = #tpu.pipeline_mode<synchronous>, transform_indices = @transform_5, window_bounds = array<i64: 54, 12>}, {pipeline_mode = #tpu.pipeline_mode<synchronous>, transform_indices = @transform_6, window_bounds = array<i64: 1, 12>}, {pipeline_mode = #tpu.pipeline_mode<synchronous>, transform_indices = @transform_7, window_bounds = array<i64: 12, 3>}, {pipeline_mode = #tpu.pipeline_mode<synchronous>, transform_indices = @transform_8, window_bounds = array<i64: 1, 3>}, {transform_indices = @transform_9, window_bounds = array<i64: 8, 3>}]} {
    %c0 = arith.constant 0 : index
    %c0_0 = arith.constant 0 : index
    %0 = vector.load %arg1[%c0, %c0_0] : memref<8x16xf32, #tpu.memory_space<vmem>>, vector<8x16xf32>
    %c0_1 = arith.constant 0 : index
    %c0_2 = arith.constant 0 : index
    %1 = vector.load %arg2[%c0_1, %c0_2] : memref<16x18xf32, #tpu.memory_space<vmem>>, vector<16x18xf32>
    %cst = arith.constant dense<0.000000e+00> : vector<8x18xf32>
    %2 = tpu.matmul %0, %1, %cst {dimension_numbers = #tpu.dot_dimension_numbers<[1], [0], [0], [1], [0, 0, 1, 1], [], []>} : vector<8x16xf32>, vector<16x18xf32>, vector<8x18xf32> -> vector<8x18xf32>
    %c0_3 = arith.constant 0 : index
    %c0_4 = arith.constant 0 : index
    %3 = vector.load %arg3[%c0_3, %c0_4] : memref<1x18xf32, #tpu.memory_space<vmem>>, vector<1x18xf32>
    %4 = vector.broadcast %3 : vector<1x18xf32> to vector<8x18xf32>
    %5 = arith.addf %2, %4 : vector<8x18xf32>
    %cst_5 = arith.constant 0.000000e+00 : f32
    %6 = vector.broadcast %cst_5 : f32 to vector<8x18xf32>
    %7 = arith.maximumf %5, %6 : vector<8x18xf32>
    %c0_6 = arith.constant 0 : index
    %c0_7 = arith.constant 0 : index
    %8 = vector.load %arg4[%c0_6, %c0_7] : memref<18x54xf32, #tpu.memory_space<vmem>>, vector<18x54xf32>
    %cst_8 = arith.constant dense<0.000000e+00> : vector<8x54xf32>
    %9 = tpu.matmul %7, %8, %cst_8 {dimension_numbers = #tpu.dot_dimension_numbers<[1], [0], [0], [1], [0, 0, 1, 1], [], []>} : vector<8x18xf32>, vector<18x54xf32>, vector<8x54xf32> -> vector<8x54xf32>
    %c0_9 = arith.constant 0 : index
    %c0_10 = arith.constant 0 : index
    %10 = vector.load %arg5[%c0_9, %c0_10] : memref<1x54xf32, #tpu.memory_space<vmem>>, vector<1x54xf32>
    %11 = vector.broadcast %10 : vector<1x54xf32> to vector<8x54xf32>
    %12 = arith.addf %9, %11 : vector<8x54xf32>
    %cst_11 = arith.constant 0.000000e+00 : f32
    %13 = vector.broadcast %cst_11 : f32 to vector<8x54xf32>
    %14 = arith.maximumf %12, %13 : vector<8x54xf32>
    %c0_12 = arith.constant 0 : index
    %c0_13 = arith.constant 0 : index
    %15 = vector.load %arg6[%c0_12, %c0_13] : memref<54x12xf32, #tpu.memory_space<vmem>>, vector<54x12xf32>
    %cst_14 = arith.constant dense<0.000000e+00> : vector<8x12xf32>
    %16 = tpu.matmul %14, %15, %cst_14 {dimension_numbers = #tpu.dot_dimension_numbers<[1], [0], [0], [1], [0, 0, 1, 1], [], []>} : vector<8x54xf32>, vector<54x12xf32>, vector<8x12xf32> -> vector<8x12xf32>
    %c0_15 = arith.constant 0 : index
    %c0_16 = arith.constant 0 : index
    %17 = vector.load %arg7[%c0_15, %c0_16] : memref<1x12xf32, #tpu.memory_space<vmem>>, vector<1x12xf32>
    %18 = vector.broadcast %17 : vector<1x12xf32> to vector<8x12xf32>
    %19 = arith.addf %16, %18 : vector<8x12xf32>
    %cst_17 = arith.constant 0.000000e+00 : f32
    %20 = vector.broadcast %cst_17 : f32 to vector<8x12xf32>
    %21 = arith.maximumf %19, %20 : vector<8x12xf32>
    %c0_18 = arith.constant 0 : index
    %c0_19 = arith.constant 0 : index
    %22 = vector.load %arg8[%c0_18, %c0_19] : memref<12x3xf32, #tpu.memory_space<vmem>>, vector<12x3xf32>
    %cst_20 = arith.constant dense<0.000000e+00> : vector<8x3xf32>
    %23 = tpu.matmul %21, %22, %cst_20 {dimension_numbers = #tpu.dot_dimension_numbers<[1], [0], [0], [1], [0, 0, 1, 1], [], []>} : vector<8x12xf32>, vector<12x3xf32>, vector<8x3xf32> -> vector<8x3xf32>
    %c0_21 = arith.constant 0 : index
    %c0_22 = arith.constant 0 : index
    %24 = vector.load %arg9[%c0_21, %c0_22] : memref<1x3xf32, #tpu.memory_space<vmem>>, vector<1x3xf32>
    %25 = vector.broadcast %24 : vector<1x3xf32> to vector<8x3xf32>
    %26 = arith.addf %23, %25 : vector<8x3xf32>
    %cst_23 = arith.constant dense<0xFF800000> : vector<8xf32>
    %27 = vector.multi_reduction <maximumf>, %26, %cst_23 [1] : vector<8x3xf32> to vector<8xf32>
    %28 = vector.shape_cast %27 : vector<8xf32> to vector<8x1xf32>
    %29 = vector.broadcast %28 : vector<8x1xf32> to vector<8x3xf32>
    %30 = arith.subf %26, %29 : vector<8x3xf32>
    %31 = math.exp %30 : vector<8x3xf32>
    %cst_24 = arith.constant dense<0.000000e+00> : vector<8xf32>
    %32 = vector.multi_reduction <add>, %31, %cst_24 [1] : vector<8x3xf32> to vector<8xf32>
    %33 = vector.shape_cast %32 : vector<8xf32> to vector<8x1xf32>
    %34 = tpu.reciprocal %33 : vector<8x1xf32> -> vector<8x1xf32>
    %35 = vector.broadcast %34 : vector<8x1xf32> to vector<8x3xf32>
    %36 = arith.mulf %31, %35 : vector<8x3xf32>
    %c0_25 = arith.constant 0 : index
    %c0_26 = arith.constant 0 : index
    %37 = vector.load %arg10[%c0_25, %c0_26] : memref<8x3xf32, #tpu.memory_space<vmem>>, vector<8x3xf32>
    tpu.vector_store %arg10[%c0_25, %c0_26], %36 {strides = array<i32>} : memref<8x3xf32, #tpu.memory_space<vmem>>, vector<8x3xf32>,
    return
  }
  func.func @transform_0(%arg0: i32) -> (i32, i32) {
    %c0_i32 = arith.constant 0 : i32
    %c0_i32_0 = arith.constant 0 : i32
    return %arg0, %c0_i32 : i32, i32
  }
  func.func @transform_1(%arg0: i32) -> (i32, i32) {
    %c0_i32 = arith.constant 0 : i32
    %c0_i32_0 = arith.constant 0 : i32
    %c0_i32_1 = arith.constant 0 : i32
    return %c0_i32, %c0_i32_0 : i32, i32
  }
  func.func @transform_2(%arg0: i32) -> (i32, i32) {
    %c0_i32 = arith.constant 0 : i32
    %c0_i32_0 = arith.constant 0 : i32
    %c0_i32_1 = arith.constant 0 : i32
    return %c0_i32, %c0_i32_0 : i32, i32
  }
  func.func @transform_3(%arg0: i32) -> (i32, i32) {
    %c0_i32 = arith.constant 0 : i32
    %c0_i32_0 = arith.constant 0 : i32
    %c0_i32_1 = arith.constant 0 : i32
    return %c0_i32, %c0_i32_0 : i32, i32
  }
  func.func @transform_4(%arg0: i32) -> (i32, i32) {
    %c0_i32 = arith.constant 0 : i32
    %c0_i32_0 = arith.constant 0 : i32
    %c0_i32_1 = arith.constant 0 : i32
    return %c0_i32, %c0_i32_0 : i32, i32
  }
  func.func @transform_5(%arg0: i32) -> (i32, i32) {
    %c0_i32 = arith.constant 0 : i32
    %c0_i32_0 = arith.constant 0 : i32
    %c0_i32_1 = arith.constant 0 : i32
    return %c0_i32, %c0_i32_0 : i32, i32
  }
  func.func @transform_6(%arg0: i32) -> (i32, i32) {
    %c0_i32 = arith.constant 0 : i32
    %c0_i32_0 = arith.constant 0 : i32
    %c0_i32_1 = arith.constant 0 : i32
    return %c0_i32, %c0_i32_0 : i32, i32
  }
  func.func @transform_7(%arg0: i32) -> (i32, i32) {
    %c0_i32 = arith.constant 0 : i32
    %c0_i32_0 = arith.constant 0 : i32
    %c0_i32_1 = arith.constant 0 : i32
    return %c0_i32, %c0_i32_0 : i32, i32
  }
  func.func @transform_8(%arg0: i32) -> (i32, i32) {
    %c0_i32 = arith.constant 0 : i32
    %c0_i32_0 = arith.constant 0 : i32
    %c0_i32_1 = arith.constant 0 : i32
    return %c0_i32, %c0_i32_0 : i32, i32
  }
  func.func @transform_9(%arg0: i32) -> (i32, i32) {
    %c0_i32 = arith.constant 0 : i32
    %c0_i32_0 = arith.constant 0 : i32
    return %arg0, %c0_i32 : i32, i32
  }
}

</mosaic_0001>

<bundles_post_ra>
// kernel: tpu_custom_call.1
= control target key start
LH: loop header
LB: loop body
LE: loop exit
PB: predicated region body
PF: predicated region fallthrough
CT: control target
= control target key end

     0   :  { %v478_v0 = vmov 0.0   ;;  %vm479_vm0 = vmmov 0   ;;  %vm42_vm1 = vcmask 130048   ;;  %vm131_vm2 = vcmask 1041408   ;;  %s615_s1 = inlined_call_operand.vmem [shape: f32[16,18], index: 1, kind: input, shape index: {}]   ;;  %s616_s0 = inlined_call_operand.vmem [shape: f32[8,16], index: 0, kind: input, shape index: {}]   ;;  %s617_s3 = inlined_call_operand.vmem [shape: f32[18,54], index: 3, kind: input, shape index: {}]   ;;  %s618_s5 = inlined_call_operand.vmem [shape: f32[54,12], index: 5, kind: input, shape index: {}]   ;;  %s619_s2 = inlined_call_operand.vmem [shape: f32[1,18], index: 2, kind: input, shape index: {}]   ;;  %s620_s4 = inlined_call_operand.vmem [shape: f32[1,54], index: 4, kind: input, shape index: {}]   ;;  %s621_s7 = inlined_call_operand.vmem [shape: f32[12,3], index: 7, kind: input, shape index: {}]   ;;  %s622_s6 = inlined_call_operand.vmem [shape: f32[1,12], index: 6, kind: input, shape index: {}]   ;;  %s623_s8 = inlined_call_operand.vmem [shape: f32[1,3], index: 8, kind: input, shape index: {}]   ;;  %s624_s9 = inlined_call_operand.vmem [shape: f32[8,3], index: 9, kind: output, shape index: {}]  }
   0x1   :  { %432 = vmatprep.subr.mxu1 %v478_v0  ;;  %v34_v1 = vld [vmem:[%s615_s1 + $0x8] sm:$0xff]  ;;  %v33_v2 = vld [vmem:[%s615_s1] sm:$0xff]  ;;  %436 = vmatprep.mubr.msk.f32.mxu1 %vm479_vm0, %v478_v0  ;;  %v119_v4 = vld [vmem:[%s617_s3 + $0x10] sm:$0x3]  ;;  %vm224_vm3 = vcmask 1045504   ;;  %vm127_vm4 = vcmask 146432  }
   0x2   :  { %433 = vmatpush3.msra.mxu1 %v34_v1  ;;  %v32_v3 = vld [vmem:[%s616_s0] sm:$0xff]  ;;  %448 = vmatprep.subr.mxu0 %v478_v0  ;;  %v118_v5 = vld [vmem:[%s617_s3 + $0x8] sm:$0xff]  ;;  %v212_v7 = vld [vmem:[%s618_s5 + $0x30] sm:$0x3f]  ;;  %vm220_vm5 = vcmask 441344   ;;  %vm312_vm6 = vcmask 1043456  }
   0x3   :  { %434 = vmatprep.subr.mxu1 %v478_v0  ;;  %462 = vmatprep.mubr.msk.f32.mxu0 %vm479_vm0, %v478_v0  ;;  %v117_v6 = vld [vmem:[%s617_s3] sm:$0xff]  ;;  %v211_v8 = vld [vmem:[%s618_s5 + $0x28] sm:$0xff]  ;;  %v209_v10 = vld [vmem:[%s618_s5 + $0x18] sm:$0xff]  ;;  %vm308_vm7 = vcmask 97280   ;;  %vm386_vm8 = vcmask 23552  }
   0x4   :  { %435 = vmatpush3.msra.mxu1 %v33_v2  ;;  %449 = vmatpush3.msk.msra.mxu0 %vm224_vm3, %v212_v7  ;;  %v210_v9 = vld [vmem:[%s618_s5 + $0x20] sm:$0xff]  ;;  %v208_v16 = vld [vmem:[%s618_s5 + $0x10] sm:$0xff]  ;;  %v207_v17 = vld [vmem:[%s618_s5 + $0x8] sm:$0xff] }
   0x5   :  { %437 = vmatmul.mubr.msk.f32.vlgmr.msra.gmra.mxu1 %vm42_vm1, %v32_v3  ;;  %439 = vmatprep.subr.mxu1 %v478_v0  ;;  %v403_v11 = vld [vmem:[%s619_s2] ss:$0 sm:$0xff]  ;;  %v300_v24 = vld [vmem:[%s621_s7 + $0x8] sm:$0xf] }
   0x6   :  { %445 = vmatprep.mubr.msk.f32.mxu1 %vm479_vm0, %v478_v0  ;;  %440 = vmatpush3.msk.msra.mxu1 %vm131_vm2, %v119_v4  ;;  %v206_v18 = vld [vmem:[%s618_s5] sm:$0xff] }
   0x7   :  { %441 = vmatprep.subr.mxu1 %v478_v0  ;;  %450 = vmatprep.subr.mxu0 %v478_v0  ;;  %v405_v19 = vld [vmem:[%s620_s4] ss:$0 sm:$0xff] }
   0x8   :  { %442 = vmatpush3.msra.mxu1 %v118_v5  ;;  %451 = vmatpush3.msra.mxu0 %v211_v8  ;;  %v299_v25 = vld [vmem:[%s621_s7] sm:$0xff] }
   0x9   :  { %443 = vmatprep.subr.mxu1 %v478_v0  ;;  %452 = vmatprep.subr.mxu0 %v478_v0  ;;  %v408_v26 = vld [vmem:[%s622_s6] ss:$0 sm:$0xff] }
   0xa   :  { %444 = vmatpush3.msra.mxu1 %v117_v6  ;;  %453 = vmatpush3.msra.mxu0 %v210_v9  ;;  %v411_v31 = vld [vmem:[%s623_s8] ss:$0 sm:$0xff] }
   0xb   :  { %465 = vmatprep.subr.mxu1 %v478_v0  ;;  %454 = vmatprep.subr.mxu0 %v478_v0 }
   0xc   :  { %455 = vmatpush3.msra.mxu0 %v209_v10 }
   0xd   :  { %456 = vmatprep.subr.mxu0 %v478_v0 }
   0xe   :  { %457 = vmatpush3.msra.mxu0 %v208_v16 }
   0xf   :  { %458 = vmatprep.subr.mxu0 %v478_v0 }
  0x10   :  { %459 = vmatpush3.msra.mxu0 %v207_v17 }
  0x11   :  { %460 = vmatprep.subr.mxu0 %v478_v0 }
  0x12   :  { %461 = vmatpush3.msra.mxu0 %v206_v18 }
  0xc5   :  { %v112_v12 = vpop.f32.mrf.mxu1 }
  0xc6   :  { %v113_v13 = vadd.f32 %v403_v11, %v112_v12 }
  0xc7   :  { %v438_v14 = vpop.f32.mrf.mxu1 }
  0xc8   :  { %v116_v15 = vmax.f32 %v113_v13, 0.0 }
  0xca   :  { %446 = vmatmul.mubr.msk.f32.vlgmr.msra.gmra.mxu1 %vm127_vm4, %v116_v15 }
  0xcb   :  { %469 = vmatprep.mubr.msk.f32.mxu1 %vm479_vm0, %v478_v0  ;;  %466 = vmatpush3.msk.msra.mxu1 %vm312_vm6, %v300_v24 }
  0xcc   :  { %467 = vmatprep.subr.mxu1 %v478_v0 }
  0xcd   :  { %468 = vmatpush3.msra.mxu1 %v299_v25 }
 0x18a   :  { %v201_v20 = vpop.f32.mrf.mxu1 }
 0x18b   :  { %v202_v21 = vadd.f32 %v405_v19, %v201_v20 }
 0x18c   :  { %v447_v22 = vpop.f32.mrf.mxu1 }
 0x18d   :  { %v205_v23 = vmax.f32 %v202_v21, 0.0 }
 0x18f   :  { %463 = vmatmul.mubr.msk.f32.vlgmr.msra.gmra.mxu0 %vm220_vm5, %v205_v23 }
 0x24f   :  { %v294_v27 = vpop.f32.mrf.mxu0 }
 0x250   :  { %v295_v28 = vadd.f32 %v408_v26, %v294_v27 }
 0x251   :  { %v464_v29 = vpop.f32.mrf.mxu0 }
 0x252   :  { %v298_v30 = vmax.f32 %v295_v28, 0.0 }
 0x254   :  { %470 = vmatmul.mubr.msk.f32.vlgmr.msra.gmra.mxu1 %vm308_vm7, %v298_v30 }
 0x314   :  { %v382_v32 = vpop.f32.mrf.mxu1 }
 0x315   :  { %v383_v33 = vadd.f32 %v411_v31, %v382_v32 }
 0x316   :  { %v471_v34 = vpop.f32.mrf.mxu1 }
 0x317   :  { %v387_v35 = vsel %vm386_vm8, %v383_v33, -inf }
 0x318   :  { %388 = vmax.xlane.f32.xlu0 %v387_v35 }
 0x3a1   :  { %v389_v36 = vpop.xlane.xlu0 %388 }
 0x3a2   :  { %v390_v37 = vsub.f32 %v383_v33, %v389_v36 }
 0x3a4   :  { %v391_v38 = vmul.f32 1.442695, %v390_v37 }
 0x3a6   :  { %474 = vpow2.f32 %v391_v38 }
 0x3b3   :  { %v475_v39 = vpop.eup %474 }
 0x3b4   :  { %v393_v40 = vsel %vm386_vm8, %v475_v39, 0.0 }
 0x3b5   :  { %394 = vadd.xlane.f32.xlu0 %v393_v40 }
 0x43e   :  { %v395_v41 = vpop.xlane.xlu0 %394 }
 0x43f   :  { %476 = vrcp.f32 %v395_v41 }
 0x44c   :  { %v477_v42 = vpop.eup %476 }
 0x44d   :  { %v397_v43 = vmul.f32 %v477_v42, %v475_v39 }
 0x44f   :  { %398 = vst.msk [vmem:[%s624_s9] sm:$0xff] %vm386_vm8, %v397_v43 }

</bundles_post_ra>
